<compile_context>
chip_gen: v7x
topology: tpu7x:2x2x1
jax: 0.10.0
libtpu: 0.0.40
codegen_flags: <defaults>
</compile_context>

<pallas_src>
import jax
import jax.numpy as jnp
import numpy as np
from jax import lax
from jax.experimental import pallas as pl
from jax.experimental.pallas import tpu as pltpu


# ---------------------------------------------------------------------------
# Hardware queries (trace-time safe, conservative fallbacks).
# ---------------------------------------------------------------------------
def _vmem_capacity_bytes() -> int:
    try:
        return int(pltpu.get_tpu_info().vmem_capacity_bytes)
    except Exception:
        return 64 * 2**20            # v7x physical VMEM; safe lower bound


def _tensorcores_per_chip() -> int:
    try:
        kind = jax.devices()[0].device_kind.lower()
        return 2 if "v7" in kind else 1       # v5e/v6e: 1 TC; v7x: 2 TCs
    except Exception:
        return 1


# ---------------------------------------------------------------------------
# Kernel
# ---------------------------------------------------------------------------
def _make_rnn_kernel(t_chunk: int):
    unroll = t_chunk if t_chunk <= 8 else 8

    def kernel(xp_ref, w_hh_ref, w_fc_ref, b_fc_ref, out_ref, h_scratch):
        c = pl.program_id(1)                    # time-chunk index (serial axis)

        @pl.when(c == 0)
        def _():
            h_scratch[...] = jnp.zeros_like(h_scratch)

        w_hh = w_hh_ref[...]                    # (H, H) bf16, resident weight
        h0 = w_hh_ref.dtype and h_scratch[...]  # (tb, H) f32 carried state
        h0 = h_scratch[...]

        def step(t, h):
            # Contiguous (tb, H) load; bf16-fed MXU matmul, f32 accumulation.
            pre = xp_ref[t] + jnp.dot(h.astype(w_hh.dtype), w_hh,
                                      preferred_element_type=jnp.float32)
            return jnp.tanh(pre)                # f32 tanh on the EUP

        h = lax.fori_loop(0, t_chunk, step, h0, unroll=unroll)
        h_scratch[...] = h

        # Final Linear layer, only after the last timestep of the last chunk.
        @pl.when(c == pl.num_programs(1) - 1)
        def _():
            out_ref[...] = (jnp.dot(h, w_fc_ref[...],
                                    preferred_element_type=jnp.float32)
                            + b_fc_ref[...]).astype(out_ref.dtype)

    return kernel


# ---------------------------------------------------------------------------
# Tiling helpers
# ---------------------------------------------------------------------------
def _pick_time_chunk(T: int, tb: int, H: int, O: int, budget_bytes: int) -> int:
    """Largest divisor of T whose double-buffered xp block (plus resident
    weights, output block and hidden-state scratch) fits the VMEM budget."""
    fixed = (2 * 2 * H * H            # W_hh bf16, double-buffered
             + 2 * 4 * (H * O + O)    # W_fc + b_fc, f32, double-buffered
             + 2 * 4 * tb * O         # out block, double-buffered
             + 4 * tb * H)            # h scratch
    per_step = 2 * 4 * tb * H         # xp rows, f32, double-buffered
    max_c = max(1, (budget_bytes - fixed) // per_step)
    max_c = int(min(max_c, 512, T))
    for c in range(max_c, 0, -1):
        if T % c == 0:
            return c
    return 1


# ---------------------------------------------------------------------------
# Wrapper
# ---------------------------------------------------------------------------
def vanilla_rnn_forward(x_bsd, params):
    """x_bsd: (batch, seq, input_size) f32 (batch_first) -> (batch, output_size)."""
    w_ih_t, w_hh_t, b_rnn, w_fc_t, b_fc = params
    B, T, _ = x_bsd.shape
    H = w_hh_t.shape[1]
    O = w_fc_t.shape[1]

    # Hoisted non-recurrent projection with fused biases, laid out time-major
    # so every timestep inside the kernel is a contiguous (tb, H) tile.
    xp = jnp.einsum("btd,dh->tbh", x_bsd, w_ih_t) + b_rnn          # (T, B, H)

    # bf16 feed of the serial critical-path matmul (f32 accumulate in-kernel).
    w_hh_bf16 = w_hh_t.astype(jnp.bfloat16)

    # Batch split only on 2-TC chips (v7x) and only with sublane-aligned tb.
    n_tc = _tensorcores_per_chip()
    if n_tc > 1 and B % (8 * n_tc) == 0:
        tb = B // n_tc
    else:
        tb = B
    nb = B // tb

    # VMEM-aware time chunking + explicit per-chip VMEM limit.
    cap = _vmem_capacity_bytes()
    budget = min(cap // 2, 48 * 2**20)
    t_chunk = _pick_time_chunk(T, tb, H, O, budget)
    n_chunks = T // t_chunk

    need = (2 * 4 * tb * t_chunk * H      # xp block, double-buffered, f32
            + 2 * 2 * H * H               # W_hh bf16, double-buffered
            + 2 * 4 * (H * O + O)         # W_fc + b_fc, double-buffered
            + 2 * 4 * tb * O              # out block, double-buffered
            + 4 * tb * H)                 # hidden-state scratch
    vmem_limit = int(min(max(2 * need + (2 << 20), 8 << 20), cap - (4 << 20)))

    grid_spec = pltpu.PrefetchScalarGridSpec(
        num_scalar_prefetch=0,
        grid=(nb, n_chunks),
        in_specs=[
            pl.BlockSpec((t_chunk, tb, H), lambda b, c: (c, b, 0)),  # xp chunk
            pl.BlockSpec((H, H), lambda b, c: (0, 0)),               # W_hh^T bf16
            pl.BlockSpec((H, O), lambda b, c: (0, 0)),               # W_fc^T
            pl.BlockSpec((1, O), lambda b, c: (0, 0)),               # b_fc
        ],
        out_specs=pl.BlockSpec((tb, O), lambda b, c: (b, 0)),
        scratch_shapes=[pltpu.VMEM((tb, H), jnp.float32)],
    )

    return pl.pallas_call(
        _make_rnn_kernel(t_chunk),
        out_shape=jax.ShapeDtypeStruct((B, O), jnp.float32),
        grid_spec=grid_spec,
        compiler_params=pltpu.CompilerParams(
            dimension_semantics=("parallel", "arbitrary"),  # batch ∥, time serial
            vmem_limit_bytes=vmem_limit),
    )(xp, w_hh_bf16, w_fc_t, b_fc)


# ---------------------------------------------------------------------------
# Params + reference
# ---------------------------------------------------------------------------
def init_params(key, input_size, hidden_size, output_size):
    """Deterministic init mimicking PyTorch's U(-1/sqrt(H), 1/sqrt(H))."""
    ks = jax.random.split(key, 6)
    s = 1.0 / np.sqrt(hidden_size)
    u = lambda k, shape: jax.random.uniform(k, shape, jnp.float32, -s, s)
    w_ih = u(ks[0], (hidden_size, input_size))       # PyTorch layouts
    w_hh = u(ks[1], (hidden_size, hidden_size))
    b_ih = u(ks[2], (hidden_size,))
    b_hh = u(ks[3], (hidden_size,))
    w_fc = u(ks[4], (output_size, hidden_size))
    b_fc = u(ks[5], (output_size,))
    # Pre-transposed weights for (B, K) @ (K, N) contractions; fused RNN biases.
    return (w_ih.T, w_hh.T, (b_ih + b_hh)[None, :], w_fc.T, b_fc[None, :])


def reference_forward(x_bsd, params, recur_dtype=jnp.float32):
    """Pure-JAX reference. recur_dtype=bf16 mirrors the kernel's MXU feed."""
    w_ih_t, w_hh_t, b_rnn, w_fc_t, b_fc = params
    B, T, _ = x_bsd.shape
    H = w_hh_t.shape[0]
    w_hh_c = w_hh_t.astype(recur_dtype)
    h = jnp.zeros((B, H), jnp.float32)
    for t in range(T):
        pre = (x_bsd[:, t, :] @ w_ih_t + b_rnn
               + jnp.dot(h.astype(recur_dtype), w_hh_c,
                         preferred_element_type=jnp.float32))
        h = jnp.tanh(pre)
    return h @ w_fc_t + b_fc


if __name__ == "__main__":
    batch, seq, input_size, hidden_size, output_size = 4, 8, 16, 32, 8

    key = jax.random.PRNGKey(0)
    k_x, k_p = jax.random.split(key)
    x = jax.random.normal(k_x, (batch, seq, input_size), jnp.float32)
    params = init_params(k_p, input_size, hidden_size, output_size)

    out = jax.block_until_ready(jax.jit(vanilla_rnn_forward)(x, params))

    # Tight check against a reference that mirrors the bf16-fed recurrence.
    ref_bf16 = reference_forward(x, params, recur_dtype=jnp.bfloat16)
    np.testing.assert_allclose(np.asarray(out), np.asarray(ref_bf16),
                               rtol=1e-3, atol=1e-3)
    # Looser sanity check against the pure-f32 reference semantics.
    ref_f32 = reference_forward(x, params, recur_dtype=jnp.float32)
    np.testing.assert_allclose(np.asarray(out), np.asarray(ref_f32),
                               rtol=5e-2, atol=5e-2)
    print("KERNEL_OK")
</pallas_src>

<mosaic_0001>
module attributes {stable_mosaic.version = 11 : i64} {
  func.func @kernel(%arg0: i32, %arg1: i32, %arg2: memref<8x4x32xf32, #tpu.memory_space<vmem>>, %arg3: memref<32x32xbf16, #tpu.memory_space<vmem>>, %arg4: memref<32x8xf32, #tpu.memory_space<vmem>>, %arg5: memref<1x8xf32, #tpu.memory_space<vmem>>, %arg6: memref<4x8xf32, #tpu.memory_space<vmem>>, %arg7: memref<4x32xf32, #tpu.memory_space<vmem>>) attributes {dimension_semantics = [#tpu.dimension_semantics<parallel>, #tpu.dimension_semantics<arbitrary>], iteration_bounds = array<i64: 1, 1>, scalar_prefetch = 0 : i64, scratch_operands = 1 : i64, tpu.core_type = #tpu.core_type<tc>, window_params = [{transform_indices = @transform_0, window_bounds = array<i64: 8, 4, 32>}, {pipeline_mode = #tpu.pipeline_mode<synchronous>, transform_indices = @transform_1, window_bounds = array<i64: 32, 32>}, {pipeline_mode = #tpu.pipeline_mode<synchronous>, transform_indices = @transform_2, window_bounds = array<i64: 32, 8>}, {pipeline_mode = #tpu.pipeline_mode<synchronous>, transform_indices = @transform_3, window_bounds = array<i64: 1, 8>}, {transform_indices = @transform_4, window_bounds = array<i64: 4, 8>}]} {
    %c0_i32 = arith.constant 0 : i32
    %0 = arith.cmpi eq, %arg1, %c0_i32 : i32
    %1 = arith.extui %0 : i1 to i32
    %c0_i32_0 = arith.constant 0 : i32
    %2 = arith.cmpi ne, %1, %c0_i32_0 : i32
    scf.if %2 {
      %cst_32 = arith.constant 0.000000e+00 : f32
      %65 = vector.broadcast %cst_32 : f32 to vector<4x32xf32>
      %c0_33 = arith.constant 0 : index
      %c0_34 = arith.constant 0 : index
      %66 = vector.load %arg7[%c0_33, %c0_34] : memref<4x32xf32, #tpu.memory_space<vmem>>, vector<4x32xf32>
      tpu.vector_store %arg7[%c0_33, %c0_34], %65 {strides = array<i32>} : memref<4x32xf32, #tpu.memory_space<vmem>>, vector<4x32xf32>,
    } else {
    }
    %c0 = arith.constant 0 : index
    %c0_1 = arith.constant 0 : index
    %3 = vector.load %arg3[%c0, %c0_1] : memref<32x32xbf16, #tpu.memory_space<vmem>>, vector<32x32xbf16>
    %c0_2 = arith.constant 0 : index
    %c0_3 = arith.constant 0 : index
    %4 = vector.load %arg7[%c0_2, %c0_3] : memref<4x32xf32, #tpu.memory_space<vmem>>, vector<4x32xf32>
    %c0_i32_4 = arith.constant 0 : i32
    %5 = arith.index_cast %c0_i32_4 : i32 to index
    %c0_5 = arith.constant 0 : index
    %c0_6 = arith.constant 0 : index
    %6 = vector.load %arg2[%5, %c0_5, %c0_6] : memref<8x4x32xf32, #tpu.memory_space<vmem>>, vector<1x4x32xf32>
    %7 = vector.shape_cast %6 : vector<1x4x32xf32> to vector<4x32xf32>
    %8 = arith.truncf %4 : vector<4x32xf32> to vector<4x32xbf16>
    %cst = arith.constant dense<0.000000e+00> : vector<4x32xf32>
    %9 = tpu.matmul %8, %3, %cst {dimension_numbers = #tpu.dot_dimension_numbers<[1], [0], [0], [1], [0, 0, 1, 1], [], []>} : vector<4x32xbf16>, vector<32x32xbf16>, vector<4x32xf32> -> vector<4x32xf32>
    %10 = arith.addf %7, %9 : vector<4x32xf32>
    %11 = math.tanh %10 : vector<4x32xf32>
    %c1_i32 = arith.constant 1 : i32
    %12 = arith.index_cast %c1_i32 : i32 to index
    %c0_7 = arith.constant 0 : index
    %c0_8 = arith.constant 0 : index
    %13 = vector.load %arg2[%12, %c0_7, %c0_8] : memref<8x4x32xf32, #tpu.memory_space<vmem>>, vector<1x4x32xf32>
    %14 = vector.shape_cast %13 : vector<1x4x32xf32> to vector<4x32xf32>
    %15 = arith.truncf %11 : vector<4x32xf32> to vector<4x32xbf16>
    %cst_9 = arith.constant dense<0.000000e+00> : vector<4x32xf32>
    %16 = tpu.matmul %15, %3, %cst_9 {dimension_numbers = #tpu.dot_dimension_numbers<[1], [0], [0], [1], [0, 0, 1, 1], [], []>} : vector<4x32xbf16>, vector<32x32xbf16>, vector<4x32xf32> -> vector<4x32xf32>
    %17 = arith.addf %14, %16 : vector<4x32xf32>
    %18 = math.tanh %17 : vector<4x32xf32>
    %c2_i32 = arith.constant 2 : i32
    %19 = arith.index_cast %c2_i32 : i32 to index
    %c0_10 = arith.constant 0 : index
    %c0_11 = arith.constant 0 : index
    %20 = vector.load %arg2[%19, %c0_10, %c0_11] : memref<8x4x32xf32, #tpu.memory_space<vmem>>, vector<1x4x32xf32>
    %21 = vector.shape_cast %20 : vector<1x4x32xf32> to vector<4x32xf32>
    %22 = arith.truncf %18 : vector<4x32xf32> to vector<4x32xbf16>
    %cst_12 = arith.constant dense<0.000000e+00> : vector<4x32xf32>
    %23 = tpu.matmul %22, %3, %cst_12 {dimension_numbers = #tpu.dot_dimension_numbers<[1], [0], [0], [1], [0, 0, 1, 1], [], []>} : vector<4x32xbf16>, vector<32x32xbf16>, vector<4x32xf32> -> vector<4x32xf32>
    %24 = arith.addf %21, %23 : vector<4x32xf32>
    %25 = math.tanh %24 : vector<4x32xf32>
    %c3_i32 = arith.constant 3 : i32
    %26 = arith.index_cast %c3_i32 : i32 to index
    %c0_13 = arith.constant 0 : index
    %c0_14 = arith.constant 0 : index
    %27 = vector.load %arg2[%26, %c0_13, %c0_14] : memref<8x4x32xf32, #tpu.memory_space<vmem>>, vector<1x4x32xf32>
    %28 = vector.shape_cast %27 : vector<1x4x32xf32> to vector<4x32xf32>
    %29 = arith.truncf %25 : vector<4x32xf32> to vector<4x32xbf16>
    %cst_15 = arith.constant dense<0.000000e+00> : vector<4x32xf32>
    %30 = tpu.matmul %29, %3, %cst_15 {dimension_numbers = #tpu.dot_dimension_numbers<[1], [0], [0], [1], [0, 0, 1, 1], [], []>} : vector<4x32xbf16>, vector<32x32xbf16>, vector<4x32xf32> -> vector<4x32xf32>
    %31 = arith.addf %28, %30 : vector<4x32xf32>
    %32 = math.tanh %31 : vector<4x32xf32>
    %c4_i32 = arith.constant 4 : i32
    %33 = arith.index_cast %c4_i32 : i32 to index
    %c0_16 = arith.constant 0 : index
    %c0_17 = arith.constant 0 : index
    %34 = vector.load %arg2[%33, %c0_16, %c0_17] : memref<8x4x32xf32, #tpu.memory_space<vmem>>, vector<1x4x32xf32>
    %35 = vector.shape_cast %34 : vector<1x4x32xf32> to vector<4x32xf32>
    %36 = arith.truncf %32 : vector<4x32xf32> to vector<4x32xbf16>
    %cst_18 = arith.constant dense<0.000000e+00> : vector<4x32xf32>
    %37 = tpu.matmul %36, %3, %cst_18 {dimension_numbers = #tpu.dot_dimension_numbers<[1], [0], [0], [1], [0, 0, 1, 1], [], []>} : vector<4x32xbf16>, vector<32x32xbf16>, vector<4x32xf32> -> vector<4x32xf32>
    %38 = arith.addf %35, %37 : vector<4x32xf32>
    %39 = math.tanh %38 : vector<4x32xf32>
    %c5_i32 = arith.constant 5 : i32
    %40 = arith.index_cast %c5_i32 : i32 to index
    %c0_19 = arith.constant 0 : index
    %c0_20 = arith.constant 0 : index
    %41 = vector.load %arg2[%40, %c0_19, %c0_20] : memref<8x4x32xf32, #tpu.memory_space<vmem>>, vector<1x4x32xf32>
    %42 = vector.shape_cast %41 : vector<1x4x32xf32> to vector<4x32xf32>
    %43 = arith.truncf %39 : vector<4x32xf32> to vector<4x32xbf16>
    %cst_21 = arith.constant dense<0.000000e+00> : vector<4x32xf32>
    %44 = tpu.matmul %43, %3, %cst_21 {dimension_numbers = #tpu.dot_dimension_numbers<[1], [0], [0], [1], [0, 0, 1, 1], [], []>} : vector<4x32xbf16>, vector<32x32xbf16>, vector<4x32xf32> -> vector<4x32xf32>
    %45 = arith.addf %42, %44 : vector<4x32xf32>
    %46 = math.tanh %45 : vector<4x32xf32>
    %c6_i32 = arith.constant 6 : i32
    %47 = arith.index_cast %c6_i32 : i32 to index
    %c0_22 = arith.constant 0 : index
    %c0_23 = arith.constant 0 : index
    %48 = vector.load %arg2[%47, %c0_22, %c0_23] : memref<8x4x32xf32, #tpu.memory_space<vmem>>, vector<1x4x32xf32>
    %49 = vector.shape_cast %48 : vector<1x4x32xf32> to vector<4x32xf32>
    %50 = arith.truncf %46 : vector<4x32xf32> to vector<4x32xbf16>
    %cst_24 = arith.constant dense<0.000000e+00> : vector<4x32xf32>
    %51 = tpu.matmul %50, %3, %cst_24 {dimension_numbers = #tpu.dot_dimension_numbers<[1], [0], [0], [1], [0, 0, 1, 1], [], []>} : vector<4x32xbf16>, vector<32x32xbf16>, vector<4x32xf32> -> vector<4x32xf32>
    %52 = arith.addf %49, %51 : vector<4x32xf32>
    %53 = math.tanh %52 : vector<4x32xf32>
    %c7_i32 = arith.constant 7 : i32
    %54 = arith.index_cast %c7_i32 : i32 to index
    %c0_25 = arith.constant 0 : index
    %c0_26 = arith.constant 0 : index
    %55 = vector.load %arg2[%54, %c0_25, %c0_26] : memref<8x4x32xf32, #tpu.memory_space<vmem>>, vector<1x4x32xf32>
    %56 = vector.shape_cast %55 : vector<1x4x32xf32> to vector<4x32xf32>
    %57 = arith.truncf %53 : vector<4x32xf32> to vector<4x32xbf16>
    %cst_27 = arith.constant dense<0.000000e+00> : vector<4x32xf32>
    %58 = tpu.matmul %57, %3, %cst_27 {dimension_numbers = #tpu.dot_dimension_numbers<[1], [0], [0], [1], [0, 0, 1, 1], [], []>} : vector<4x32xbf16>, vector<32x32xbf16>, vector<4x32xf32> -> vector<4x32xf32>
    %59 = arith.addf %56, %58 : vector<4x32xf32>
    %60 = math.tanh %59 : vector<4x32xf32>
    %c8_i32 = arith.constant 8 : i32
    %c0_28 = arith.constant 0 : index
    %c0_29 = arith.constant 0 : index
    %61 = vector.load %arg7[%c0_28, %c0_29] : memref<4x32xf32, #tpu.memory_space<vmem>>, vector<4x32xf32>
    tpu.vector_store %arg7[%c0_28, %c0_29], %60 {strides = array<i32>} : memref<4x32xf32, #tpu.memory_space<vmem>>, vector<4x32xf32>,
    %c0_i32_30 = arith.constant 0 : i32
    %62 = arith.cmpi eq, %arg1, %c0_i32_30 : i32
    %63 = arith.extui %62 : i1 to i32
    %c0_i32_31 = arith.constant 0 : i32
    %64 = arith.cmpi ne, %63, %c0_i32_31 : i32
    scf.if %64 {
      %c0_32 = arith.constant 0 : index
      %c0_33 = arith.constant 0 : index
      %65 = vector.load %arg4[%c0_32, %c0_33] : memref<32x8xf32, #tpu.memory_space<vmem>>, vector<32x8xf32>
      %cst_34 = arith.constant dense<0.000000e+00> : vector<4x8xf32>
      %66 = tpu.matmul %60, %65, %cst_34 {dimension_numbers = #tpu.dot_dimension_numbers<[1], [0], [0], [1], [0, 0, 1, 1], [], []>} : vector<4x32xf32>, vector<32x8xf32>, vector<4x8xf32> -> vector<4x8xf32>
      %c0_35 = arith.constant 0 : index
      %c0_36 = arith.constant 0 : index
      %67 = vector.load %arg5[%c0_35, %c0_36] : memref<1x8xf32, #tpu.memory_space<vmem>>, vector<1x8xf32>
      %68 = vector.broadcast %67 : vector<1x8xf32> to vector<4x8xf32>
      %69 = arith.addf %66, %68 : vector<4x8xf32>
      %c0_37 = arith.constant 0 : index
      %c0_38 = arith.constant 0 : index
      %70 = vector.load %arg6[%c0_37, %c0_38] : memref<4x8xf32, #tpu.memory_space<vmem>>, vector<4x8xf32>
      tpu.vector_store %arg6[%c0_37, %c0_38], %69 {strides = array<i32>} : memref<4x8xf32, #tpu.memory_space<vmem>>, vector<4x8xf32>,
    } else {
    }
    return
  }
  func.func @transform_0(%arg0: i32, %arg1: i32) -> (i32, i32, i32) {
    %c0_i32 = arith.constant 0 : i32
    %c0_i32_0 = arith.constant 0 : i32
    return %arg1, %arg0, %c0_i32 : i32, i32, i32
  }
  func.func @transform_1(%arg0: i32, %arg1: i32) -> (i32, i32) {
    %c0_i32 = arith.constant 0 : i32
    %c0_i32_0 = arith.constant 0 : i32
    %c0_i32_1 = arith.constant 0 : i32
    return %c0_i32, %c0_i32_0 : i32, i32
  }
  func.func @transform_2(%arg0: i32, %arg1: i32) -> (i32, i32) {
    %c0_i32 = arith.constant 0 : i32
    %c0_i32_0 = arith.constant 0 : i32
    %c0_i32_1 = arith.constant 0 : i32
    return %c0_i32, %c0_i32_0 : i32, i32
  }
  func.func @transform_3(%arg0: i32, %arg1: i32) -> (i32, i32) {
    %c0_i32 = arith.constant 0 : i32
    %c0_i32_0 = arith.constant 0 : i32
    %c0_i32_1 = arith.constant 0 : i32
    return %c0_i32, %c0_i32_0 : i32, i32
  }
  func.func @transform_4(%arg0: i32, %arg1: i32) -> (i32, i32) {
    %c0_i32 = arith.constant 0 : i32
    %c0_i32_0 = arith.constant 0 : i32
    return %arg0, %c0_i32 : i32, i32
  }
}

</mosaic_0001>

<bundles_post_ra>
// kernel: vanilla_rnn_forward.1
= control target key start
LH: loop header
LB: loop body
LE: loop exit
PB: predicated region body
PF: predicated region fallthrough
CT: control target
= control target key end

     0   :  { %v706_v1 = vmov 0.0   ;;  %vm707_vm0 = vmmov 0   ;;  %vm23_vm1 = vcmask 257024   ;;  %s858_s0 = inlined_call_operand.vmem [shape: f32[8,4,32], index: 0, kind: input, shape index: {}]   ;;  %s859_s1 = inlined_call_operand.vmem [shape: bf16[32,32], index: 1, kind: input, shape index: {}]   ;;  %s860_s2 = inlined_call_operand.vmem [shape: f32[32,8], index: 2, kind: input, shape index: {}]   ;;  %s861_s3 = inlined_call_operand.vmem [shape: f32[1,8], index: 3, kind: input, shape index: {}]   ;;  %s862_s4 = inlined_call_operand.hbm [shape: f32[4,8], index: 4, kind: output, shape index: {}]  }
   0x1   :  { %v738_v0 = vld [vmem:[%s859_s1] sm:$0xff]   ;;  %579 = vmatprep.subr.bf16.mxu0 %v706_v1  ;;  %587 = vmatprep.subr.bf16.mxu1 %v706_v1  ;;  %v746_v2 = vld [vmem:[%s859_s1 + $0x8] sm:$0xff]  }
   0x2   :  { %580 = vmatpush3.bf16.msra.mxu0 %v738_v0  ;;  %583 = vmatprep.mubr.msk.bf16.mxu0 %vm707_vm0, %v706_v1 }
   0x3   :  { %9 = vsyncpa [#allocation4], 0  ;;  %581 = vmatprep.subr.bf16.mxu0 %v706_v1  ;;  %24 = vst.msk [vmem:[#allocation2] sm:$0xf] %vm23_vm1, %v706_v1  ;;  %588 = vmatpush3.bf16.msra.mxu1 %v738_v0  ;;  %vm44_vm2 = vcmask 261120   ;;  %v431_v61 = vld [vmem:[%s860_s2] sm:$0xff] }
   0x4   :  { %589 = vmatprep.subr.bf16.mxu1 %v706_v1  ;;  %591 = vmatprep.mubr.msk.bf16.mxu1 %vm707_vm0, %v706_v1  ;;  %v30_v5 = vld [vmem:[%s858_s0] sm:$0xf]  ;;  %v534_v13 = vld [vmem:[%s858_s0 + $0x4] sm:$0xf]  ;;  %v536_v21 = vld [vmem:[%s858_s0 + $0x8] sm:$0xf] }
   0x5   :  { %v538_v29 = vld [vmem:[%s858_s0 + $0xc] sm:$0xf]  ;;  %v540_v37 = vld [vmem:[%s858_s0 + $0x10] sm:$0xf]  ;;  %v542_v45 = vld [vmem:[%s858_s0 + $0x14] sm:$0xf] }
   0x6   :  { %582 = vmatpush3.bf16.msra.mxu0 %v746_v2  ;;  %v544_v53 = vld [vmem:[%s858_s0 + $0x18] sm:$0xf]  ;;  %v432_v62 = vld [vmem:[%s860_s2 + $0x8] sm:$0xff]  ;;  %vm515_vm3 = vcmask 60416  }
   0x7   :  { %590 = vmatpush3.bf16.msra.mxu1 %v746_v2  ;;  %595 = vmatprep.subr.bf16.mxu0 %v706_v1  ;;  %v655_v63 = vpack.c.bf16 %v432_v62, %v431_v61 }
   0x8   :  { %603 = vmatprep.subr.bf16.mxu1 %v706_v1 }
   0xa   :  { %v29_v3 = vld [vmem:[#allocation2] sm:$0xf] }
   0xb   :  { %v31_v4 = vpack.c.bf16 %v29_v3, %v29_v3 }
   0xd   :  { %584 = vmatmul.mubr.msk.bf16.vlgmr.msra.gmra.mrb[0].mxu0 %vm44_vm2, %v31_v4  ;;  %v546_v4 = vld [vmem:[%s858_s0 + $0x1c] sm:$0xf] }
   0xe   :  { %596 = vmatpush3.bf16.msra.mxu0 %v738_v0  ;;  %599 = vmatprep.mubr.msk.bf16.mxu0 %vm707_vm0, %v706_v1 }
   0xf   :  { %597 = vmatprep.subr.bf16.mxu0 %v706_v1 }
  0x12   :  { %598 = vmatpush3.bf16.msra.mxu0 %v746_v2 }
  0x13   :  { %611 = vmatprep.subr.bf16.mxu0 %v706_v1 }
  0xe0   :  { %v82_v6 = vpop.f32.mrb[0].mxu0 }
  0xe1   :  { %v88_v7 = vadd.f32 %v82_v6, %v30_v5  ;;  %v585_v8 = vpop.f32.mrb[1].mxu0 }
  0xe2   :  { %v85_v9 = vpop.f32.mrb[2].mxu0 }
  0xe3   :  { %666 = vtanh.f32 %v88_v7  ;;  %v586_v10 = vpop.f32.mrb[3].mxu0 }
  0xed   :  { %v667_v11 = vpop.eup %666 }
  0xee   :  { %v92_v12 = vpack.c.bf16 %v667_v11, %v667_v11  ;;  %v548_v11 = vld [vmem:[%s861_s3] ss:$0 sm:$0xff] }
  0xf0   :  { %592 = vmatmul.mubr.msk.bf16.vlgmr.msra.gmra.mrb[0].mxu1 %vm44_vm2, %v92_v12 }
  0xf1   :  { %604 = vmatpush3.bf16.msra.mxu1 %v738_v0  ;;  %607 = vmatprep.mubr.msk.bf16.mxu1 %vm707_vm0, %v706_v1 }
  0xf2   :  { %605 = vmatprep.subr.bf16.mxu1 %v706_v1 }
  0xf5   :  { %606 = vmatpush3.bf16.msra.mxu1 %v746_v2 }
  0xf6   :  { %619 = vmatprep.subr.bf16.mxu1 %v706_v1 }
 0x1c3   :  { %v130_v14 = vpop.f32.mrb[0].mxu1 }
 0x1c4   :  { %v136_v15 = vadd.f32 %v534_v13, %v130_v14  ;;  %v593_v16 = vpop.f32.mrb[1].mxu1 }
 0x1c5   :  { %v133_v17 = vpop.f32.mrb[2].mxu1 }
 0x1c6   :  { %668 = vtanh.f32 %v136_v15  ;;  %v594_v18 = vpop.f32.mrb[3].mxu1 }
 0x1d0   :  { %v669_v19 = vpop.eup %668 }
 0x1d1   :  { %v140_v20 = vpack.c.bf16 %v669_v19, %v669_v19 }
 0x1d3   :  { %600 = vmatmul.mubr.msk.bf16.vlgmr.msra.gmra.mrb[4].mxu0 %vm44_vm2, %v140_v20 }
 0x1d4   :  { %612 = vmatpush3.bf16.msra.mxu0 %v738_v0  ;;  %615 = vmatprep.mubr.msk.bf16.mxu0 %vm707_vm0, %v706_v1 }
 0x1d5   :  { %613 = vmatprep.subr.bf16.mxu0 %v706_v1 }
 0x1d8   :  { %614 = vmatpush3.bf16.msra.mxu0 %v746_v2 }
 0x1d9   :  { %627 = vmatprep.subr.bf16.mxu0 %v706_v1 }
 0x2a6   :  { %v178_v22 = vpop.f32.mrb[4].mxu0 }
 0x2a7   :  { %v184_v23 = vadd.f32 %v536_v21, %v178_v22  ;;  %v601_v24 = vpop.f32.mrb[5].mxu0 }
 0x2a8   :  { %v181_v25 = vpop.f32.mrb[6].mxu0 }
 0x2a9   :  { %670 = vtanh.f32 %v184_v23  ;;  %v602_v26 = vpop.f32.mrb[7].mxu0 }
 0x2b3   :  { %v671_v27 = vpop.eup %670 }
 0x2b4   :  { %v188_v28 = vpack.c.bf16 %v671_v27, %v671_v27 }
 0x2b6   :  { %608 = vmatmul.mubr.msk.bf16.vlgmr.msra.gmra.mrb[4].mxu1 %vm44_vm2, %v188_v28 }
 0x2b7   :  { %620 = vmatpush3.bf16.msra.mxu1 %v738_v0  ;;  %623 = vmatprep.mubr.msk.bf16.mxu1 %vm707_vm0, %v706_v1 }
 0x2b8   :  { %621 = vmatprep.subr.bf16.mxu1 %v706_v1 }
 0x2bb   :  { %622 = vmatpush3.bf16.msra.mxu1 %v746_v2 }
 0x2bc   :  { %635 = vmatprep.subr.bf16.mxu1 %v706_v1 }
 0x389   :  { %v226_v30 = vpop.f32.mrb[4].mxu1 }
 0x38a   :  { %v232_v31 = vadd.f32 %v538_v29, %v226_v30  ;;  %v609_v32 = vpop.f32.mrb[5].mxu1 }
 0x38b   :  { %v229_v33 = vpop.f32.mrb[6].mxu1 }
 0x38c   :  { %672 = vtanh.f32 %v232_v31  ;;  %v610_v34 = vpop.f32.mrb[7].mxu1 }
 0x396   :  { %v673_v35 = vpop.eup %672 }
 0x397   :  { %v236_v36 = vpack.c.bf16 %v673_v35, %v673_v35 }
 0x399   :  { %616 = vmatmul.mubr.msk.bf16.vlgmr.msra.gmra.mrb[8].mxu0 %vm44_vm2, %v236_v36 }
 0x39a   :  { %628 = vmatpush3.bf16.msra.mxu0 %v738_v0  ;;  %631 = vmatprep.mubr.msk.bf16.mxu0 %vm707_vm0, %v706_v1 }
 0x39b   :  { %629 = vmatprep.subr.bf16.mxu0 %v706_v1 }
 0x39e   :  { %630 = vmatpush3.bf16.msra.mxu0 %v746_v2 }
 0x46c   :  { %v274_v38 = vpop.f32.mrb[8].mxu0 }
 0x46d   :  { %v280_v39 = vadd.f32 %v540_v37, %v274_v38  ;;  %v617_v40 = vpop.f32.mrb[9].mxu0 }
 0x46e   :  { %v277_v41 = vpop.f32.mrb[10].mxu0 }
 0x46f   :  { %674 = vtanh.f32 %v280_v39  ;;  %v618_v42 = vpop.f32.mrb[11].mxu0 }
 0x479   :  { %v675_v43 = vpop.eup %674 }
 0x47a   :  { %v284_v44 = vpack.c.bf16 %v675_v43, %v675_v43 }
 0x47c   :  { %624 = vmatmul.mubr.msk.bf16.vlgmr.msra.gmra.mrb[8].mxu1 %vm44_vm2, %v284_v44 }
 0x47d   :  { %636 = vmatpush3.bf16.msra.mxu1 %v738_v0  ;;  %639 = vmatprep.mubr.msk.bf16.mxu1 %vm707_vm0, %v706_v1  ;;  %v708_v0 = vmov 0.0|0.0  }
 0x47e   :  { %637 = vmatprep.subr.bf16.mxu1 %v706_v1  ;;  %654 = vmatprep.subr.bf16.mxu0 %v708_v0 }
 0x481   :  { %638 = vmatpush3.bf16.msra.mxu1 %v746_v2  ;;  %v434_v2 = vld [vmem:[%s860_s2 + $0x18] sm:$0xff] }
 0x54f   :  { %v322_v46 = vpop.f32.mrb[8].mxu1 }
 0x550   :  { %v328_v47 = vadd.f32 %v542_v45, %v322_v46  ;;  %v625_v48 = vpop.f32.mrb[9].mxu1 }
 0x551   :  { %v325_v49 = vpop.f32.mrb[10].mxu1 }
 0x552   :  { %676 = vtanh.f32 %v328_v47  ;;  %v626_v50 = vpop.f32.mrb[11].mxu1 }
 0x55c   :  { %v677_v51 = vpop.eup %676 }
 0x55d   :  { %v332_v52 = vpack.c.bf16 %v677_v51, %v677_v51 }
 0x55f   :  { %632 = vmatmul.mubr.msk.bf16.vlgmr.msra.gmra.mrb[12].mxu0 %vm44_vm2, %v332_v52 }
 0x560   :  { %651 = vmatprep.mubr.msk.f32.mxu0 %vm707_vm0, %v706_v1  ;;  %656 = vmatpush3.bf16.msra.mxu0 %v655_v63  ;;  %v433_v1 = vld [vmem:[%s860_s2 + $0x10] sm:$0xff]  ;;  %s709_s2 = smov [#allocation3]  }
 0x561   :  { %657 = vmatprep.subr.bf16.mxu0 %v708_v0  ;;  %v658_v3 = vpack.c.bf16 %v434_v2, %v433_v1  ;;  %s523_s18 = sshll.u32 %s709_s2, 4  ;;  %s524_s18 = int_to_ptr.vmem [resolvable:$true] %s523_s18 }
 0x562   :  { %s682_s0 = scalar_lea.vmem %s524_s18, 64  ;;  %p687_p1 = scmp.lt.s32.totalorder %s524_s18, %s524_s18 }
 0x563   :  { %p683_p0 = scmp.ne.s32.totalorder %s524_s18, %s682_s0  ;;  %p688_p2 = scmp.lt.s32.totalorder %s682_s0, %s682_s0 }
 0x564   :  { %659 = vmatpush3.bf16.msra.mxu0 %v658_v3 }
 0x565   :  { %p689_p3 = por %p688_p2, %p687_p1 }
 0x567   :  { %p690_p4 = pnand %p689_p3, %p683_p0 }
 0x632   :  { %v370_v54 = vpop.f32.mrb[12].mxu0 }
 0x633   :  { %v376_v55 = vadd.f32 %v544_v53, %v370_v54  ;;  %v633_v56 = vpop.f32.mrb[13].mxu0 }
 0x634   :  { %v373_v57 = vpop.f32.mrb[14].mxu0 }
 0x635   :  { %678 = vtanh.f32 %v376_v55  ;;  %v634_v58 = vpop.f32.mrb[15].mxu0 }
 0x63f   :  { %v679_v59 = vpop.eup %678 }
 0x640   :  { %v380_v60 = vpack.c.bf16 %v679_v59, %v679_v59 }
 0x642   :  { %640 = vmatmul.mubr.msk.bf16.vlgmr.msra.gmra.mrb[12].mxu1 %vm44_vm2, %v380_v60 }
 0x715   :  { %v418_v5 = vpop.f32.mrb[12].mxu1 }
 0x716   :  { %v424_v6 = vadd.f32 %v546_v4, %v418_v5  ;;  %v641_v7 = vpop.f32.mrb[13].mxu1 }
 0x717   :  { %v421_v8 = vpop.f32.mrb[14].mxu1 }
 0x718   :  { %680 = vtanh.f32 %v424_v6  ;;  %v642_v9 = vpop.f32.mrb[15].mxu1 }
 0x722   :  { %v681_v10 = vpop.eup %680 }
 0x723   :  { %427 = vst.msk [vmem:[#allocation2] sm:$0xf] %vm23_vm1, %v681_v10  ;;  %652 = vmatmul.mubr.msk.f32.vlgmr.msra.gmra.mrb[16].mxu0 %vm44_vm2, %v681_v10 }
 0x7f6   :  { %v511_v12 = vpop.f32.mrb[16].mxu0 }
 0x7f7   :  { %v512_v13 = vadd.f32 %v548_v11, %v511_v12  ;;  %v653_v14 = vpop.f32.mrb[17].mxu0 }
 0x7f9   :  { %516 = vst.msk [vmem:[#allocation3] sm:$0xf] %vm515_vm3, %v512_v13 }
 0x7fa   :  { %693 = shalt.err (!%p690_p4)
}
 0x7fb   :  { %s694_s20 = scalar_lea.hbm %s862_s4, 64 }
 0x7fc   :  { %p695_p5 = scmp.ne.s32.totalorder %s862_s4, %s694_s20  ;;  %p698_p6 = scmp.lt.u32.totalorder %s694_s20, %s862_s4 }
 0x7fe   :  { %p700_p7 = pnand %p698_p6, %p695_p5 }
 0x800   :  { %703 = shalt.err (!%p700_p7)
}
 0x801   :  { %526 = dma.vmem_to_hbm [thread:$0]  %s524_s18, 64, %s862_s4, [#allocation4]  }
 0x802   :  { %704 = dma.done.wait [#allocation4], 64  }
 0x803   :  { %705 = vsyncadd [#allocation4], 4294967232 }
 0x804   :  { %530 = vsyncpa [#allocation4], 1 }

</bundles_post_ra>
